<compile_context>
chip_gen: v7x
topology: tpu7x:2x2x1
jax: 0.10.0
libtpu: 0.0.40
codegen_flags: <defaults>
</compile_context>

<pallas_src>
import functools

import jax
import jax.numpy as jnp
from jax.experimental import pallas as pl
from jax.experimental.pallas import tpu as pltpu

_NEG_BIG = -1e30


def _chip_flags():
    """(use_bf16_exp, keep_f32_mask) derived from the local TPU generation."""
    try:
        kind = jax.devices()[0].device_kind.lower()
    except Exception:  # pragma: no cover - defensive
        kind = ""
    use_bf16_exp = ("v6" in kind) or ("v7" in kind)   # bf16 EUP only on v6e/v7x
    keep_f32_mask = "v7" not in kind                  # v7x: 64 MiB VMEM, skip f32 copy
    return use_bf16_exp, keep_f32_mask


def _gat_layer(x16, mask, ones_col, w_ref, b_ref, *, e_col, agg_width, use_bf16_exp):
    """One GATConv layer (heads=1, negative_slope=0.2, add_self_loops=True).

    x16:   (N, F_in) bf16 node features
    mask:  (N, N) additive mask bias (0 on edges/self-loops, -1e30 elsewhere)
    w_ref: (F_in, W) bf16 augmented weight [w | w@a_dst^T | w@a_src^T | 0-pad]
    """
    # One MXU pass gives h, e_dst and e_src simultaneously.
    h_aug = jnp.dot(x16, w_ref[...], preferred_element_type=jnp.float32)   # (N, W) f32
    h16 = h_aug[:, :agg_width].astype(jnp.bfloat16)
    e_dst = h_aug[:, e_col:e_col + 1]                                      # (N, 1) f32
    e_src16 = h_aug[:, e_col + 1:e_col + 2].astype(jnp.bfloat16)           # (N, 1) bf16
    # Broadcast e_src across rows via a bf16 K=1 outer product on the MXU:
    # src_row[i, j] = e_src[j]  (no explicit transpose, no M=1 matmul).
    src_row = jax.lax.dot_general(
        ones_col, e_src16, (((1,), (1,)), ((), ())),
        preferred_element_type=jnp.float32)                                # (N, N) f32
    e = e_dst + src_row                                                    # [target, source]
    e = jnp.maximum(e, 0.2 * e)                                            # LeakyReLU(0.2)
    logits = e + mask                                                      # additive adjacency bias
    m = jnp.max(logits, axis=-1, keepdims=True)
    z = logits - m
    if use_bf16_exp:
        # v6e/v7x: bf16 EUP roughly doubles exp throughput; p is already bf16
        # for the aggregation matmul.
        p = jnp.exp(z.astype(jnp.bfloat16))
        den = jnp.sum(p, axis=-1, keepdims=True, dtype=jnp.float32)
        alpha16 = p * pl.reciprocal(den, approx=True).astype(jnp.bfloat16)
    else:
        # v5e/v4: no bf16 EUP/VPU, keep the exp stream in f32.
        p = jnp.exp(z)
        den = jnp.sum(p, axis=-1, keepdims=True)
        alpha16 = (p * pl.reciprocal(den, approx=True)).astype(jnp.bfloat16)
    out = jnp.dot(alpha16, h16, preferred_element_type=jnp.float32)        # (N, agg_width)
    return out + b_ref[...]


def gat_c_kernel(x_ref, mask_ref,
                 w1_ref, b1_ref, w2_ref, b2_ref, w3_ref, b3_ref,
                 out_ref, *, out_dim, use_bf16_exp, keep_f32_mask):
    n = x_ref.shape[0]
    hidden = b1_ref.shape[1]
    pad3 = w3_ref.shape[1]

    x16 = x_ref[...]                                   # bf16, pre-cast in wrapper
    if keep_f32_mask:
        mask = mask_ref[...].astype(jnp.float32)       # cast once, reused by 3 layers
    else:
        mask = mask_ref[...]                           # v7x: save N^2*4B of VMEM
    ones_col = jnp.ones((n, 1), jnp.bfloat16)          # hoisted, reused by 3 layers

    h1 = _gat_layer(x16, mask, ones_col, w1_ref, b1_ref,
                    e_col=hidden, agg_width=hidden, use_bf16_exp=use_bf16_exp)
    h1 = jnp.maximum(h1, 0.0).astype(jnp.bfloat16)                         # ReLU
    # TODO(synk): F.dropout(..., training=self.training) is identity in eval mode; not applied.

    h2 = _gat_layer(h1, mask, ones_col, w2_ref, b2_ref,
                    e_col=hidden, agg_width=hidden, use_bf16_exp=use_bf16_exp)
    h2 = jnp.maximum(h2, 0.0).astype(jnp.bfloat16)                         # ReLU

    h3 = _gat_layer(h2, mask, ones_col, w3_ref, b3_ref,
                    e_col=out_dim, agg_width=pad3, use_bf16_exp=use_bf16_exp)  # (N, pad3)

    # Masked log_softmax over the first out_dim lanes; lane-dense (N, pad3) store.
    # Note: h3 columns out_dim / out_dim+1 carry e_dst/e_src leakage from the
    # augmented weight; they (and the zero pad lanes) are forced to -1e30 here
    # and sliced away in the wrapper, so results are unaffected.
    col = jax.lax.broadcasted_iota(jnp.int32, h3.shape, 1)
    z = jnp.where(col < out_dim, h3, _NEG_BIG)
    m = jnp.max(z, axis=-1, keepdims=True)
    z = z - m
    lse = jnp.log(jnp.sum(jnp.exp(z), axis=-1, keepdims=True))   # invalid lanes underflow to 0
    out_ref[...] = z - lse


def gat_c_forward(x, mask_bias, params, *, out_dim):
    n, f_in = x.shape
    hidden = params["b1"].shape[1]
    w1_cols = params["w1"].shape[1]
    w2_cols = params["w2"].shape[1]
    pad3 = params["w3"].shape[1]

    use_bf16_exp, keep_f32_mask = _chip_flags()

    x16 = x.astype(jnp.bfloat16)                       # pre-cast: halves x DMA, no VPU cast
    args = (x16, mask_bias,
            params["w1"], params["b1"],
            params["w2"], params["b2"],
            params["w3"], params["b3"])

    # Rough advisory cost estimate for XLA's scheduler.
    flops = (2 * n * f_in * w1_cols
             + 2 * n * hidden * w2_cols
             + 2 * n * hidden * pad3
             + 2 * n * n * (hidden + hidden + pad3)    # alpha @ h aggregations
             + 3 * 2 * n * n)                          # K=1 broadcast outer products
    transcendentals = 3 * n * n + n * pad3 + 7 * n
    bytes_accessed = sum(int(a.size) * a.dtype.itemsize for a in args) + n * pad3 * 4

    vmem = pl.BlockSpec(memory_space=pltpu.MemorySpace.VMEM)
    out = pl.pallas_call(
        functools.partial(gat_c_kernel, out_dim=out_dim,
                          use_bf16_exp=use_bf16_exp, keep_f32_mask=keep_f32_mask),
        out_shape=jax.ShapeDtypeStruct((n, pad3), jnp.float32),
        in_specs=[vmem] * len(args),
        out_specs=vmem,
        cost_estimate=pl.CostEstimate(flops=int(flops),
                                      transcendentals=int(transcendentals),
                                      bytes_accessed=int(bytes_accessed)),
        compiler_params=pltpu.CompilerParams(vmem_limit_bytes=64 * 1024 * 1024),
    )(*args)
    # Keep the lane-dense in-kernel store; slice back to out_dim here.
    return out[:, :out_dim]


def _glorot(key, shape):
    fan_in, fan_out = shape[-2], shape[-1]
    limit = (6.0 / (fan_in + fan_out)) ** 0.5
    return jax.random.uniform(key, shape, jnp.float32, -limit, limit)


def init_params(key, input_dim, hidden_dim, output_dim):
    ks = jax.random.split(key, 9)
    dims = [(input_dim, hidden_dim), (hidden_dim, hidden_dim), (hidden_dim, output_dim)]
    params = {}
    for i, (fi, fo) in enumerate(dims, start=1):
        params[f"w{i}"] = _glorot(ks[3 * (i - 1) + 0], (fi, fo))
        params[f"as{i}"] = _glorot(ks[3 * (i - 1) + 1], (1, fo))
        params[f"ad{i}"] = _glorot(ks[3 * (i - 1) + 2], (1, fo))
        params[f"b{i}"] = jnp.zeros((1, fo), jnp.float32)
    return params


def _round_up(v, m=128):
    return -(-v // m) * m


def prepare_params(raw, hidden, out_dim):
    """Fold attention vectors into the weights, pad all layers lane-dense, cast to bf16."""
    def aug(w, a_src, a_dst, pad_to):
        w_aug = jnp.concatenate([w, w @ a_dst.T, w @ a_src.T], axis=1)
        if pad_to > w_aug.shape[1]:
            w_aug = jnp.pad(w_aug, ((0, 0), (0, pad_to - w_aug.shape[1])))
        return w_aug.astype(jnp.bfloat16)

    pad12 = _round_up(hidden + 2)          # 256 for hidden=128 (no 2-lane MXU tail)
    pad3 = max(128, _round_up(out_dim + 2))
    return {
        "w1": aug(raw["w1"], raw["as1"], raw["ad1"], pad12),
        "b1": raw["b1"].astype(jnp.float32),
        "w2": aug(raw["w2"], raw["as2"], raw["ad2"], pad12),
        "b2": raw["b2"].astype(jnp.float32),
        "w3": aug(raw["w3"], raw["as3"], raw["ad3"], pad3),
        "b3": jnp.pad(raw["b3"], ((0, 0), (0, pad3 - out_dim))).astype(jnp.float32),
    }


def edge_index_to_mask_bias(edge_index, n):
    """Dense additive attention mask: 0 where edge j->i or i==j (self-loop), else -1e30."""
    src, dst = edge_index[0], edge_index[1]
    adj = jnp.zeros((n, n), jnp.float32).at[dst, src].set(1.0)   # row=target, col=source
    adj = jnp.maximum(adj, jnp.eye(n, dtype=jnp.float32))        # add_self_loops=True
    return jnp.where(adj > 0.0, 0.0, _NEG_BIG).astype(jnp.bfloat16)


if __name__ == "__main__":
    N, INPUT_DIM, HIDDEN, OUTPUT_DIM = 16, 16, 128, 8

    key = jax.random.PRNGKey(0)
    k_x, k_p = jax.random.split(key)

    # deterministic small bidirectional ring graph
    idx = jnp.arange(N)
    src = jnp.concatenate([idx, (idx + 1) % N])
    dst = jnp.concatenate([(idx + 1) % N, idx])
    edge_index = jnp.stack([src, dst], axis=0)                   # (2, 2N)

    x = jax.random.normal(k_x, (N, INPUT_DIM), jnp.float32)
    mask_bias = edge_index_to_mask_bias(edge_index, N)
    raw_params = init_params(k_p, INPUT_DIM, HIDDEN, OUTPUT_DIM)
    params = prepare_params(raw_params, HIDDEN, OUTPUT_DIM)

    fwd = jax.jit(gat_c_forward, static_argnames=("out_dim",))
    out = fwd(x, mask_bias, params, out_dim=OUTPUT_DIM)
    out = jax.block_until_ready(out)
    assert out.shape == (N, OUTPUT_DIM)
    assert bool(jnp.all(jnp.isfinite(out)))
    print("KERNEL_OK")
</pallas_src>

<mosaic_0001>
module attributes {stable_mosaic.version = 11 : i64} {
  func.func @gat_c_kernel(%arg0: memref<16x16xbf16, #tpu.memory_space<vmem>>, %arg1: memref<16x16xbf16, #tpu.memory_space<vmem>>, %arg2: memref<16x256xbf16, #tpu.memory_space<vmem>>, %arg3: memref<1x128xf32, #tpu.memory_space<vmem>>, %arg4: memref<128x256xbf16, #tpu.memory_space<vmem>>, %arg5: memref<1x128xf32, #tpu.memory_space<vmem>>, %arg6: memref<128x128xbf16, #tpu.memory_space<vmem>>, %arg7: memref<1x128xf32, #tpu.memory_space<vmem>>, %arg8: memref<16x128xf32, #tpu.memory_space<vmem>>) attributes {dimension_semantics = [], scalar_prefetch = 0 : i64, scratch_operands = 0 : i64, tpu.core_type = #tpu.core_type<tc>} {
    %c0 = arith.constant 0 : index
    %c0_0 = arith.constant 0 : index
    %0 = vector.load %arg0[%c0, %c0_0] : memref<16x16xbf16, #tpu.memory_space<vmem>>, vector<16x16xbf16>
    %c0_1 = arith.constant 0 : index
    %c0_2 = arith.constant 0 : index
    %1 = vector.load %arg1[%c0_1, %c0_2] : memref<16x16xbf16, #tpu.memory_space<vmem>>, vector<16x16xbf16>
    %2 = arith.extf %1 : vector<16x16xbf16> to vector<16x16xf32>
    %cst = arith.constant 1.000000e+00 : bf16
    %3 = vector.broadcast %cst : bf16 to vector<16x1xbf16>
    %c0_3 = arith.constant 0 : index
    %c0_4 = arith.constant 0 : index
    %4 = vector.load %arg2[%c0_3, %c0_4] : memref<16x256xbf16, #tpu.memory_space<vmem>>, vector<16x256xbf16>
    %cst_5 = arith.constant dense<0.000000e+00> : vector<16x256xf32>
    %5 = tpu.matmul %0, %4, %cst_5 {dimension_numbers = #tpu.dot_dimension_numbers<[1], [0], [0], [1], [0, 0, 1, 1], [], []>} : vector<16x16xbf16>, vector<16x256xbf16>, vector<16x256xf32> -> vector<16x256xf32>
    %6 = vector.extract_strided_slice %5 {offsets = [0, 0], sizes = [16, 128], strides = [1, 1]} : vector<16x256xf32> to vector<16x128xf32>
    %7 = arith.truncf %6 : vector<16x128xf32> to vector<16x128xbf16>
    %8 = vector.extract_strided_slice %5 {offsets = [0, 128], sizes = [16, 1], strides = [1, 1]} : vector<16x256xf32> to vector<16x1xf32>
    %9 = vector.extract_strided_slice %5 {offsets = [0, 129], sizes = [16, 1], strides = [1, 1]} : vector<16x256xf32> to vector<16x1xf32>
    %10 = arith.truncf %9 : vector<16x1xf32> to vector<16x1xbf16>
    %cst_6 = arith.constant dense<0.000000e+00> : vector<16x16xf32>
    %11 = tpu.matmul %3, %10, %cst_6 {dimension_numbers = #tpu.dot_dimension_numbers<[1], [1], [0], [0], [0, 0, 1, 0], [], []>} : vector<16x1xbf16>, vector<16x1xbf16>, vector<16x16xf32> -> vector<16x16xf32>
    %12 = vector.broadcast %8 : vector<16x1xf32> to vector<16x16xf32>
    %13 = arith.addf %12, %11 : vector<16x16xf32>
    %cst_7 = arith.constant 2.000000e-01 : f32
    %14 = vector.broadcast %cst_7 : f32 to vector<16x16xf32>
    %15 = arith.mulf %14, %13 : vector<16x16xf32>
    %16 = arith.maximumf %13, %15 : vector<16x16xf32>
    %17 = arith.addf %16, %2 : vector<16x16xf32>
    %cst_8 = arith.constant dense<0xFF800000> : vector<16xf32>
    %18 = vector.multi_reduction <maximumf>, %17, %cst_8 [1] : vector<16x16xf32> to vector<16xf32>
    %19 = vector.shape_cast %18 : vector<16xf32> to vector<16x1xf32>
    %20 = vector.broadcast %19 : vector<16x1xf32> to vector<16x16xf32>
    %21 = arith.subf %17, %20 : vector<16x16xf32>
    %22 = math.exp %21 : vector<16x16xf32>
    %cst_9 = arith.constant dense<0.000000e+00> : vector<16xf32>
    %23 = vector.multi_reduction <add>, %22, %cst_9 [1] : vector<16x16xf32> to vector<16xf32>
    %24 = vector.shape_cast %23 : vector<16xf32> to vector<16x1xf32>
    %25 = tpu.reciprocal %24 {approx = true} : vector<16x1xf32> -> vector<16x1xf32>
    %26 = vector.broadcast %25 : vector<16x1xf32> to vector<16x16xf32>
    %27 = arith.mulf %22, %26 : vector<16x16xf32>
    %28 = arith.truncf %27 : vector<16x16xf32> to vector<16x16xbf16>
    %cst_10 = arith.constant dense<0.000000e+00> : vector<16x128xf32>
    %29 = tpu.matmul %28, %7, %cst_10 {dimension_numbers = #tpu.dot_dimension_numbers<[1], [0], [0], [1], [0, 0, 1, 1], [], []>} : vector<16x16xbf16>, vector<16x128xbf16>, vector<16x128xf32> -> vector<16x128xf32>
    %c0_11 = arith.constant 0 : index
    %c0_12 = arith.constant 0 : index
    %30 = vector.load %arg3[%c0_11, %c0_12] : memref<1x128xf32, #tpu.memory_space<vmem>>, vector<1x128xf32>
    %31 = vector.broadcast %30 : vector<1x128xf32> to vector<16x128xf32>
    %32 = arith.addf %29, %31 : vector<16x128xf32>
    %cst_13 = arith.constant 0.000000e+00 : f32
    %33 = vector.broadcast %cst_13 : f32 to vector<16x128xf32>
    %34 = arith.maximumf %32, %33 : vector<16x128xf32>
    %35 = arith.truncf %34 : vector<16x128xf32> to vector<16x128xbf16>
    %c0_14 = arith.constant 0 : index
    %c0_15 = arith.constant 0 : index
    %36 = vector.load %arg4[%c0_14, %c0_15] : memref<128x256xbf16, #tpu.memory_space<vmem>>, vector<128x256xbf16>
    %cst_16 = arith.constant dense<0.000000e+00> : vector<16x256xf32>
    %37 = tpu.matmul %35, %36, %cst_16 {dimension_numbers = #tpu.dot_dimension_numbers<[1], [0], [0], [1], [0, 0, 1, 1], [], []>} : vector<16x128xbf16>, vector<128x256xbf16>, vector<16x256xf32> -> vector<16x256xf32>
    %38 = vector.extract_strided_slice %37 {offsets = [0, 0], sizes = [16, 128], strides = [1, 1]} : vector<16x256xf32> to vector<16x128xf32>
    %39 = arith.truncf %38 : vector<16x128xf32> to vector<16x128xbf16>
    %40 = vector.extract_strided_slice %37 {offsets = [0, 128], sizes = [16, 1], strides = [1, 1]} : vector<16x256xf32> to vector<16x1xf32>
    %41 = vector.extract_strided_slice %37 {offsets = [0, 129], sizes = [16, 1], strides = [1, 1]} : vector<16x256xf32> to vector<16x1xf32>
    %42 = arith.truncf %41 : vector<16x1xf32> to vector<16x1xbf16>
    %cst_17 = arith.constant dense<0.000000e+00> : vector<16x16xf32>
    %43 = tpu.matmul %3, %42, %cst_17 {dimension_numbers = #tpu.dot_dimension_numbers<[1], [1], [0], [0], [0, 0, 1, 0], [], []>} : vector<16x1xbf16>, vector<16x1xbf16>, vector<16x16xf32> -> vector<16x16xf32>
    %44 = vector.broadcast %40 : vector<16x1xf32> to vector<16x16xf32>
    %45 = arith.addf %44, %43 : vector<16x16xf32>
    %cst_18 = arith.constant 2.000000e-01 : f32
    %46 = vector.broadcast %cst_18 : f32 to vector<16x16xf32>
    %47 = arith.mulf %46, %45 : vector<16x16xf32>
    %48 = arith.maximumf %45, %47 : vector<16x16xf32>
    %49 = arith.addf %48, %2 : vector<16x16xf32>
    %cst_19 = arith.constant dense<0xFF800000> : vector<16xf32>
    %50 = vector.multi_reduction <maximumf>, %49, %cst_19 [1] : vector<16x16xf32> to vector<16xf32>
    %51 = vector.shape_cast %50 : vector<16xf32> to vector<16x1xf32>
    %52 = vector.broadcast %51 : vector<16x1xf32> to vector<16x16xf32>
    %53 = arith.subf %49, %52 : vector<16x16xf32>
    %54 = math.exp %53 : vector<16x16xf32>
    %cst_20 = arith.constant dense<0.000000e+00> : vector<16xf32>
    %55 = vector.multi_reduction <add>, %54, %cst_20 [1] : vector<16x16xf32> to vector<16xf32>
    %56 = vector.shape_cast %55 : vector<16xf32> to vector<16x1xf32>
    %57 = tpu.reciprocal %56 {approx = true} : vector<16x1xf32> -> vector<16x1xf32>
    %58 = vector.broadcast %57 : vector<16x1xf32> to vector<16x16xf32>
    %59 = arith.mulf %54, %58 : vector<16x16xf32>
    %60 = arith.truncf %59 : vector<16x16xf32> to vector<16x16xbf16>
    %cst_21 = arith.constant dense<0.000000e+00> : vector<16x128xf32>
    %61 = tpu.matmul %60, %39, %cst_21 {dimension_numbers = #tpu.dot_dimension_numbers<[1], [0], [0], [1], [0, 0, 1, 1], [], []>} : vector<16x16xbf16>, vector<16x128xbf16>, vector<16x128xf32> -> vector<16x128xf32>
    %c0_22 = arith.constant 0 : index
    %c0_23 = arith.constant 0 : index
    %62 = vector.load %arg5[%c0_22, %c0_23] : memref<1x128xf32, #tpu.memory_space<vmem>>, vector<1x128xf32>
    %63 = vector.broadcast %62 : vector<1x128xf32> to vector<16x128xf32>
    %64 = arith.addf %61, %63 : vector<16x128xf32>
    %cst_24 = arith.constant 0.000000e+00 : f32
    %65 = vector.broadcast %cst_24 : f32 to vector<16x128xf32>
    %66 = arith.maximumf %64, %65 : vector<16x128xf32>
    %67 = arith.truncf %66 : vector<16x128xf32> to vector<16x128xbf16>
    %c0_25 = arith.constant 0 : index
    %c0_26 = arith.constant 0 : index
    %68 = vector.load %arg6[%c0_25, %c0_26] : memref<128x128xbf16, #tpu.memory_space<vmem>>, vector<128x128xbf16>
    %cst_27 = arith.constant dense<0.000000e+00> : vector<16x128xf32>
    %69 = tpu.matmul %67, %68, %cst_27 {dimension_numbers = #tpu.dot_dimension_numbers<[1], [0], [0], [1], [0, 0, 1, 1], [], []>} : vector<16x128xbf16>, vector<128x128xbf16>, vector<16x128xf32> -> vector<16x128xf32>
    %70 = arith.truncf %69 : vector<16x128xf32> to vector<16x128xbf16>
    %71 = vector.extract_strided_slice %69 {offsets = [0, 8], sizes = [16, 1], strides = [1, 1]} : vector<16x128xf32> to vector<16x1xf32>
    %72 = vector.extract_strided_slice %69 {offsets = [0, 9], sizes = [16, 1], strides = [1, 1]} : vector<16x128xf32> to vector<16x1xf32>
    %73 = arith.truncf %72 : vector<16x1xf32> to vector<16x1xbf16>
    %cst_28 = arith.constant dense<0.000000e+00> : vector<16x16xf32>
    %74 = tpu.matmul %3, %73, %cst_28 {dimension_numbers = #tpu.dot_dimension_numbers<[1], [1], [0], [0], [0, 0, 1, 0], [], []>} : vector<16x1xbf16>, vector<16x1xbf16>, vector<16x16xf32> -> vector<16x16xf32>
    %75 = vector.broadcast %71 : vector<16x1xf32> to vector<16x16xf32>
    %76 = arith.addf %75, %74 : vector<16x16xf32>
    %cst_29 = arith.constant 2.000000e-01 : f32
    %77 = vector.broadcast %cst_29 : f32 to vector<16x16xf32>
    %78 = arith.mulf %77, %76 : vector<16x16xf32>
    %79 = arith.maximumf %76, %78 : vector<16x16xf32>
    %80 = arith.addf %79, %2 : vector<16x16xf32>
    %cst_30 = arith.constant dense<0xFF800000> : vector<16xf32>
    %81 = vector.multi_reduction <maximumf>, %80, %cst_30 [1] : vector<16x16xf32> to vector<16xf32>
    %82 = vector.shape_cast %81 : vector<16xf32> to vector<16x1xf32>
    %83 = vector.broadcast %82 : vector<16x1xf32> to vector<16x16xf32>
    %84 = arith.subf %80, %83 : vector<16x16xf32>
    %85 = math.exp %84 : vector<16x16xf32>
    %cst_31 = arith.constant dense<0.000000e+00> : vector<16xf32>
    %86 = vector.multi_reduction <add>, %85, %cst_31 [1] : vector<16x16xf32> to vector<16xf32>
    %87 = vector.shape_cast %86 : vector<16xf32> to vector<16x1xf32>
    %88 = tpu.reciprocal %87 {approx = true} : vector<16x1xf32> -> vector<16x1xf32>
    %89 = vector.broadcast %88 : vector<16x1xf32> to vector<16x16xf32>
    %90 = arith.mulf %85, %89 : vector<16x16xf32>
    %91 = arith.truncf %90 : vector<16x16xf32> to vector<16x16xbf16>
    %cst_32 = arith.constant dense<0.000000e+00> : vector<16x128xf32>
    %92 = tpu.matmul %91, %70, %cst_32 {dimension_numbers = #tpu.dot_dimension_numbers<[1], [0], [0], [1], [0, 0, 1, 1], [], []>} : vector<16x16xbf16>, vector<16x128xbf16>, vector<16x128xf32> -> vector<16x128xf32>
    %c0_33 = arith.constant 0 : index
    %c0_34 = arith.constant 0 : index
    %93 = vector.load %arg7[%c0_33, %c0_34] : memref<1x128xf32, #tpu.memory_space<vmem>>, vector<1x128xf32>
    %94 = vector.broadcast %93 : vector<1x128xf32> to vector<16x128xf32>
    %95 = arith.addf %92, %94 : vector<16x128xf32>
    %96 = tpu.iota {dimensions = array<i32: 1>} : vector<16x128xi32>
    %c8_i32 = arith.constant 8 : i32
    %97 = vector.broadcast %c8_i32 : i32 to vector<16x128xi32>
    %98 = arith.cmpi slt, %96, %97 : vector<16x128xi32>
    %cst_35 = arith.constant -1.000000e+30 : f32
    %99 = vector.broadcast %cst_35 : f32 to vector<16x128xf32>
    %100 = arith.select %98, %95, %99 : vector<16x128xi1>, vector<16x128xf32>
    %cst_36 = arith.constant dense<0xFF800000> : vector<16xf32>
    %101 = vector.multi_reduction <maximumf>, %100, %cst_36 [1] : vector<16x128xf32> to vector<16xf32>
    %102 = vector.shape_cast %101 : vector<16xf32> to vector<16x1xf32>
    %103 = vector.broadcast %102 : vector<16x1xf32> to vector<16x128xf32>
    %104 = arith.subf %100, %103 : vector<16x128xf32>
    %105 = math.exp %104 : vector<16x128xf32>
    %cst_37 = arith.constant dense<0.000000e+00> : vector<16xf32>
    %106 = vector.multi_reduction <add>, %105, %cst_37 [1] : vector<16x128xf32> to vector<16xf32>
    %107 = vector.shape_cast %106 : vector<16xf32> to vector<16x1xf32>
    %108 = math.log %107 : vector<16x1xf32>
    %109 = vector.broadcast %108 : vector<16x1xf32> to vector<16x128xf32>
    %110 = arith.subf %104, %109 : vector<16x128xf32>
    %c0_38 = arith.constant 0 : index
    %c0_39 = arith.constant 0 : index
    %111 = vector.load %arg8[%c0_38, %c0_39] : memref<16x128xf32, #tpu.memory_space<vmem>>, vector<16x128xf32>
    tpu.vector_store %arg8[%c0_38, %c0_39], %110 {strides = array<i32>} : memref<16x128xf32, #tpu.memory_space<vmem>>, vector<16x128xf32>,
    return
  }
}

</mosaic_0001>

<bundles_post_ra>
// kernel: gat_c_forward.1
= control target key start
LH: loop header
LB: loop body
LE: loop exit
PB: predicated region body
PF: predicated region fallthrough
CT: control target
= control target key end

     0   :  { %13 = vsyncpa [#allocation3], 0  ;;  %s1620_s0 = inlined_call_operand.hbm [shape: bf16[16,16], index: 0, kind: input, shape index: {}]   ;;  %s1621_s1 = inlined_call_operand.hbm [shape: bf16[16,16], index: 1, kind: input, shape index: {}]   ;;  %s1622_s2 = inlined_call_operand.hbm [shape: bf16[16,256], index: 2, kind: input, shape index: {}]   ;;  %s1623_s3 = inlined_call_operand.hbm [shape: f32[1,128], index: 3, kind: input, shape index: {}]   ;;  %s1624_s4 = inlined_call_operand.hbm [shape: bf16[128,256], index: 4, kind: input, shape index: {}]   ;;  %s1625_s5 = inlined_call_operand.hbm [shape: f32[1,128], index: 5, kind: input, shape index: {}]   ;;  %s1626_s6 = inlined_call_operand.hbm [shape: bf16[128,128], index: 6, kind: input, shape index: {}]   ;;  %s1627_s7 = inlined_call_operand.hbm [shape: f32[1,128], index: 7, kind: input, shape index: {}]   ;;  %s1628_s8 = inlined_call_operand.hbm [shape: f32[16,128], index: 8, kind: output, shape index: {}]  }
   0x1   :  { %14 = vsyncpa [#allocation6], 0 }
   0x2   :  { %15 = vsyncpa [#allocation9], 0 }
   0x3   :  { %16 = vsyncpa [#allocation12], 0 }
   0x4   :  { %17 = vsyncpa [#allocation15], 0 }
   0x5   :  { %18 = vsyncpa [#allocation4], 0  ;;  %s1349_s27 = smov [#allocation5]   ;;  %s1350_s29 = smov [#allocation8]  }
   0x6   :  { %s36_s28 = sshll.u32 %s1349_s27, 4  ;;  %s61_s30 = sshll.u32 %s1350_s29, 4  ;;  %s37_s28 = int_to_ptr.vmem [resolvable:$true] %s36_s28  ;;  %s1414_s30 = int_to_ptr.vmem [resolvable:$true] %s61_s30 }
   0x7   :  { %s1139_s11 = scalar_lea.hbm %s1621_s1, 128 }
   0x8   :  { %p1140_p0 = scmp.ne.s32.totalorder %s1621_s1, %s1139_s11  ;;  %p1143_p1 = scmp.lt.u32.totalorder %s1139_s11, %s1621_s1 }
   0xa   :  { %p1145_p2 = pnand %p1143_p1, %p1140_p0 }
   0xc   :  { %1148 = shalt.err (!%p1145_p2)
}
   0xd   :  { %s1149_s16 = scalar_lea.vmem %s37_s28, 128  ;;  %p1154_p4 = scmp.lt.s32.totalorder %s37_s28, %s37_s28 }
   0xe   :  { %p1150_p3 = scmp.ne.s32.totalorder %s37_s28, %s1149_s16  ;;  %p1155_p5 = scmp.lt.s32.totalorder %s1149_s16, %s1149_s16 }
  0x10   :  { %p1156_p6 = por %p1155_p5, %p1154_p4 }
  0x12   :  { %p1157_p7 = pnand %p1156_p6, %p1150_p3 }
  0x14   :  { %1160 = shalt.err (!%p1157_p7)
}
  0x15   :  { %s1351_s17 = smov 64   ;;  %s1352_s18 = smov 4  }
  0x16   :  { %42 = dma.hbm_to_vmem [thread:$0]  %s1621_s1, 128, %s37_s28, [#allocation6], %s1351_s17, %s1351_s17, %s1352_s18  }
  0x17   :  { %s1161_s23 = scalar_lea.hbm %s1623_s3, 16 }
  0x18   :  { %p1162_p8 = scmp.ne.s32.totalorder %s1623_s3, %s1161_s23  ;;  %p1165_p9 = scmp.lt.u32.totalorder %s1161_s23, %s1623_s3 }
  0x1a   :  { %p1167_p10 = pnand %p1165_p9, %p1162_p8 }
  0x1c   :  { %1170 = shalt.err (!%p1167_p10)
}
  0x1d   :  { %s1171_s29 = scalar_lea.vmem %s1414_s30, 16  ;;  %s1175_s1 = scalar_lea.vmem %s1414_s30, 32 }
  0x1e   :  { %p1172_p11 = scmp.ne.s32.totalorder %s1414_s30, %s1171_s29  ;;  %p1176_p12 = scmp.lt.s32.totalorder %s1414_s30, %s1414_s30 }
  0x1f   :  { %p1177_p13 = scmp.lt.s32.totalorder %s1175_s1, %s1171_s29 }
  0x21   :  { %p1178_p0 = por %p1177_p13, %p1176_p12 }
  0x23   :  { %p1179_p1 = pnand %p1178_p0, %p1172_p11 }
  0x25   :  { %1182 = shalt.err (!%p1179_p1)
}
  0x26   :  { %64 = dma.hbm_to_vmem [thread:$0]  %s1623_s3, 16, %s1414_s30, [#allocation9]  }
  0x27   :  { %s1353_s10 = smov [#allocation11]   ;;  %s1354_s12 = smov [#allocation2]  }
  0x28   :  { %s83_s11 = sshll.u32 %s1353_s10, 4  ;;  %s24_s13 = sshll.u32 %s1354_s12, 4  ;;  %s84_s11 = int_to_ptr.vmem [resolvable:$true] %s83_s11  ;;  %s1449_s13 = int_to_ptr.vmem [resolvable:$true] %s24_s13 }
  0x29   :  { %s1183_s16 = scalar_lea.hbm %s1625_s5, 16 }
  0x2a   :  { %p1184_p2 = scmp.ne.s32.totalorder %s1625_s5, %s1183_s16  ;;  %p1187_p3 = scmp.lt.u32.totalorder %s1183_s16, %s1625_s5 }
  0x2c   :  { %p1189_p4 = pnand %p1187_p3, %p1184_p2 }
  0x2e   :  { %1192 = shalt.err (!%p1189_p4)
}
  0x2f   :  { %s1193_s3 = scalar_lea.vmem %s84_s11, 16  ;;  %s1197_s30 = scalar_lea.vmem %s84_s11, 32 }
  0x30   :  { %p1194_p5 = scmp.ne.s32.totalorder %s84_s11, %s1193_s3  ;;  %p1198_p6 = scmp.lt.s32.totalorder %s84_s11, %s84_s11 }
  0x31   :  { %p1199_p7 = scmp.lt.s32.totalorder %s1197_s30, %s1193_s3 }
  0x33   :  { %p1200_p8 = por %p1199_p7, %p1198_p6 }
  0x35   :  { %p1201_p9 = pnand %p1200_p8, %p1194_p5 }
  0x37   :  { %1204 = shalt.err (!%p1201_p9)
}
  0x38   :  { %86 = dma.hbm_to_vmem [thread:$0]  %s1625_s5, 16, %s84_s11, [#allocation12]  }
  0x39   :  { %s1205_s27 = scalar_lea.hbm %s1620_s0, 128 }
  0x3a   :  { %p1206_p10 = scmp.ne.s32.totalorder %s1620_s0, %s1205_s27  ;;  %p1209_p11 = scmp.lt.u32.totalorder %s1205_s27, %s1620_s0 }
  0x3c   :  { %p1211_p12 = pnand %p1209_p11, %p1206_p10 }
  0x3e   :  { %1214 = shalt.err (!%p1211_p12)
}
  0x3f   :  { %s1215_s10 = scalar_lea.vmem %s1449_s13, 128  ;;  %p1220_p0 = scmp.lt.s32.totalorder %s1449_s13, %s1449_s13 }
  0x40   :  { %p1216_p13 = scmp.ne.s32.totalorder %s1449_s13, %s1215_s10  ;;  %p1221_p1 = scmp.lt.s32.totalorder %s1215_s10, %s1215_s10 }
  0x42   :  { %p1222_p2 = por %p1221_p1, %p1220_p0 }
  0x44   :  { %p1223_p3 = pnand %p1222_p2, %p1216_p13 }
  0x46   :  { %1226 = shalt.err (!%p1223_p3)
}
  0x47   :  { %30 = dma.hbm_to_vmem [thread:$0]  %s1620_s0, 128, %s1449_s13, [#allocation3], %s1351_s17, %s1351_s17, %s1352_s18  }
  0x48   :  { %s1355_s12 = smov [#allocation7]   ;;  %s1227_s19 = scalar_lea.hbm %s1622_s2, 256 }
  0x49   :  { %s48_s14 = sshll.u32 %s1355_s12, 4  ;;  %p1228_p4 = scmp.ne.s32.totalorder %s1622_s2, %s1227_s19  ;;  %s49_s14 = int_to_ptr.vmem [resolvable:$true] %s48_s14 }
  0x4a   :  { %p1231_p5 = scmp.lt.u32.totalorder %s1227_s19, %s1622_s2 }
  0x4c   :  { %p1233_p6 = pnand %p1231_p5, %p1228_p4 }
  0x4e   :  { %1236 = shalt.err (!%p1233_p6)
}
  0x4f   :  { %s1237_s30 = scalar_lea.vmem %s49_s14, 256  ;;  %p1242_p8 = scmp.lt.s32.totalorder %s49_s14, %s49_s14 }
  0x50   :  { %p1238_p7 = scmp.ne.s32.totalorder %s49_s14, %s1237_s30  ;;  %p1243_p9 = scmp.lt.s32.totalorder %s1237_s30, %s1237_s30 }
  0x52   :  { %p1244_p10 = por %p1243_p9, %p1242_p8 }
  0x54   :  { %p1245_p11 = pnand %p1244_p10, %p1238_p7 }
  0x56   :  { %1248 = shalt.err (!%p1245_p11)
}
  0x57   :  { %s1356_s0 = smov 128   ;;  %s1357_s13 = smov 8  }
  0x58   :  { %54 = dma.hbm_to_vmem [thread:$0]  %s1622_s2, 256, %s49_s14, [#allocation6], %s1356_s0, %s1356_s0, %s1357_s13  }
  0x59   :  { %s1358_s25 = smov [#allocation10]   ;;  %s1359_s27 = smov [#allocation13]  }
  0x5a   :  { %s70_s26 = sshll.u32 %s1358_s25, 4  ;;  %s92_s29 = sshll.u32 %s1359_s27, 4  ;;  %s71_s26 = int_to_ptr.vmem [resolvable:$true] %s70_s26  ;;  %s93_s29 = int_to_ptr.vmem [resolvable:$true] %s92_s29 }
  0x5b   :  { %s1249_s9 = scalar_lea.hbm %s1624_s4, 2048 }
  0x5c   :  { %p1250_p12 = scmp.ne.s32.totalorder %s1624_s4, %s1249_s9  ;;  %p1253_p13 = scmp.lt.u32.totalorder %s1249_s9, %s1624_s4 }
  0x5e   :  { %p1255_p0 = pnand %p1253_p13, %p1250_p12 }
  0x60   :  { %1258 = shalt.err (!%p1255_p0)
}
  0x61   :  { %s1259_s2 = scalar_lea.vmem %s71_s26, 2048  ;;  %p1264_p2 = scmp.lt.s32.totalorder %s71_s26, %s71_s26 }
  0x62   :  { %p1260_p1 = scmp.ne.s32.totalorder %s71_s26, %s1259_s2  ;;  %p1265_p3 = scmp.lt.s32.totalorder %s1259_s2, %s1259_s2 }
  0x64   :  { %p1266_p4 = por %p1265_p3, %p1264_p2 }
  0x66   :  { %p1267_p5 = pnand %p1266_p4, %p1260_p1 }
  0x68   :  { %1270 = shalt.err (!%p1267_p5)
}
  0x69   :  { %76 = dma.hbm_to_vmem [thread:$0]  %s1624_s4, 2048, %s71_s26, [#allocation9], %s1356_s0, %s1356_s0, %s1357_s13  }
  0x6a   :  { %s1271_s20 = scalar_lea.hbm %s1626_s6, 1024 }
  0x6b   :  { %p1272_p6 = scmp.ne.s32.totalorder %s1626_s6, %s1271_s20  ;;  %p1275_p7 = scmp.lt.u32.totalorder %s1271_s20, %s1626_s6 }
  0x6d   :  { %p1277_p8 = pnand %p1275_p7, %p1272_p6 }
  0x6f   :  { %1280 = shalt.err (!%p1277_p8)
}
  0x70   :  { %s1281_s23 = scalar_lea.vmem %s93_s29, 1024  ;;  %p1286_p10 = scmp.lt.s32.totalorder %s93_s29, %s93_s29 }
  0x71   :  { %p1282_p9 = scmp.ne.s32.totalorder %s93_s29, %s1281_s23  ;;  %p1287_p11 = scmp.lt.s32.totalorder %s1281_s23, %s1281_s23 }
  0x73   :  { %p1288_p12 = por %p1287_p11, %p1286_p10 }
  0x75   :  { %p1289_p13 = pnand %p1288_p12, %p1282_p9 }
  0x77   :  { %1292 = shalt.err (!%p1289_p13)
}
  0x78   :  { %98 = dma.hbm_to_vmem [thread:$0]  %s1626_s6, 1024, %s93_s29, [#allocation12], %s1351_s17, %s1351_s17, %s1352_s18  }
  0x79   :  { %s1360_s25 = smov [#allocation14]   ;;  %s1293_s28 = scalar_lea.hbm %s1627_s7, 16 }
  0x7a   :  { %s105_s26 = sshll.u32 %s1360_s25, 4  ;;  %p1294_p0 = scmp.ne.s32.totalorder %s1627_s7, %s1293_s28  ;;  %s106_s26 = int_to_ptr.vmem [resolvable:$true] %s105_s26 }
  0x7b   :  { %p1297_p1 = scmp.lt.u32.totalorder %s1293_s28, %s1627_s7 }
  0x7d   :  { %p1299_p2 = pnand %p1297_p1, %p1294_p0 }
  0x7f   :  { %1302 = shalt.err (!%p1299_p2)
}
  0x80   :  { %s1303_s12 = scalar_lea.vmem %s106_s26, 16  ;;  %s1307_s6 = scalar_lea.vmem %s106_s26, 32 }
  0x81   :  { %p1304_p3 = scmp.ne.s32.totalorder %s106_s26, %s1303_s12  ;;  %p1308_p4 = scmp.lt.s32.totalorder %s106_s26, %s106_s26 }
  0x82   :  { %p1309_p5 = scmp.lt.s32.totalorder %s1307_s6, %s1303_s12 }
  0x84   :  { %p1310_p6 = por %p1309_p5, %p1308_p4 }
  0x86   :  { %p1311_p7 = pnand %p1310_p6, %p1304_p3 }
  0x88   :  { %1314 = shalt.err (!%p1311_p7)
}
  0x89   :  { %108 = dma.hbm_to_vmem [thread:$0]  %s1627_s7, 16, %s106_s26, [#allocation15]  }
  0x8a   :  { %1337 = dma.done.wait [#allocation3], 128  }
  0x8b   :  { %1338 = vsyncadd [#allocation3], 4294967168 }
  0x8c   :  { %1339 = dma.done.wait [#allocation6], 384  }
  0x8d   :  { %1340 = vsyncadd [#allocation6], 4294966912 }
  0x8e   :  { %1341 = dma.done.wait [#allocation9], 2064  }
  0x8f   :  { %1342 = vsyncadd [#allocation9], 4294965232 }
  0x90   :  { %1343 = dma.done.wait [#allocation12], 1040  }
  0x91   :  { %1344 = vsyncadd [#allocation12], 4294966256 }
  0x92   :  { %1345 = dma.done.wait [#allocation15], 16  }
  0x93   :  { %1346 = vsyncadd [#allocation15], 4294967280  ;;  %v1361_v0 = vmov 0   ;;  %v1071_v1 = vld [vmem:[#allocation7 + $0x4] ss:$8 sps:$4 sm:$0xff]   ;;  %v1074_v3 = vld [vmem:[#allocation2] sm:$0xff]  }
  0x94   :  { %194 = vmatprep.mubr.bf16.mxu0 %v1361_v0  ;;  %1068 = vset.pattern.permute.xlu1 %v1361_v0  ;;  %v1073_v2 = vld [vmem:[#allocation7] ss:$8 sps:$4 sm:$0xff]   ;;  %vm158_vm0 = vcmask 130048   ;;  %v1362_v4 = vmov 0.0   ;;  %vm1363_vm1 = vmmov 0   ;;  %s1364_s7 = smov 127  }
  0x95   :  { %1067 = vset.pattern.permute.xlu0 %v1361_v0  ;;  %162 = vmatprep.subr.bf16.mxu0 %v1071_v1  ;;  %vm210_vm2 = vcmask 7168   ;;  %v1365_v13 = vmov 1065369472   ;;  %v967_v16 = vld [vmem:[#allocation5] sm:$0xff]   ;;  %v1080_v45 = vld [vmem:[#allocation10 + $0x14] ss:$8 sps:$4 sm:$0xff]  }
  0x96   :  { %163 = vmatpush1.bf16.msra.mxu0 %v1073_v2  ;;  %991 = vmatprep.subr.bf16.mxu1 %v1362_v4  ;;  %v1552_v24 = vunpack.c.l.bf16 %v967_v16  ;;  %v1554_v27 = vunpack.c.h.bf16 %v967_v16  ;;  %v1075_v43 = vld [vmem:[#allocation10] ss:$8 sps:$4 sm:$0xff]   ;;  %v1077_v44 = vld [vmem:[#allocation10 + $0x4] ss:$8 sps:$4 sm:$0xff]   ;;  %v1078_v46 = vld [vmem:[#allocation10 + $0x10] ss:$8 sps:$4 sm:$0xff]  }
  0x97   :  { %997 = vmatprep.subr.bf16.mxu0 %v1362_v4  ;;  %993 = vmatprep.mubr.msk.bf16.mxu1 %vm1363_vm1, %v1362_v4  ;;  %v1083_v47 = vld [vmem:[#allocation10 + $0x24] ss:$8 sps:$4 sm:$0xff]   ;;  %v1081_v48 = vld [vmem:[#allocation10 + $0x20] ss:$8 sps:$4 sm:$0xff]   ;;  %v1086_v49 = vld [vmem:[#allocation10 + $0x34] ss:$8 sps:$4 sm:$0xff]  }
  0x98   :  { %v1084_v50 = vld [vmem:[#allocation10 + $0x30] ss:$8 sps:$4 sm:$0xff]   ;;  %v1089_v51 = vld [vmem:[#allocation10 + $0x44] ss:$8 sps:$4 sm:$0xff]   ;;  %v1087_v52 = vld [vmem:[#allocation10 + $0x40] ss:$8 sps:$4 sm:$0xff]  }
  0x99   :  { %932 = vmatmul.mubr.msk.bf16.vlgmr.msra.gmra.mrb[0].mxu0 %vm158_vm0, %v1074_v3  ;;  %v1092_v53 = vld [vmem:[#allocation10 + $0x54] ss:$8 sps:$4 sm:$0xff]   ;;  %v1090_v54 = vld [vmem:[#allocation10 + $0x50] ss:$8 sps:$4 sm:$0xff]   ;;  %v1095_v62 = vld [vmem:[#allocation10 + $0x64] ss:$8 sps:$4 sm:$0xff]  }
  0x9a   :  { %999 = vmatprep.mubr.msk.bf16.mxu0 %vm1363_vm1, %v1362_v4  ;;  %v1093_v63 = vld [vmem:[#allocation10 + $0x60] ss:$8 sps:$4 sm:$0xff]   ;;  %v1096_v1 = vld [vmem:[#allocation10 + $0x70] ss:$8 sps:$4 sm:$0xff]   ;;  %v934_v2 = vld [vmem:[#allocation8] ss:$0 sm:$0xff] }
  0x9b   :  { %s1367_s29 = smov 119   ;;  %s1368_s2 = smov [#allocation16]  }
  0x9c   :  { %s913_s14 = sshll.u32 %s1368_s2, 4  ;;  %s914_s14 = int_to_ptr.vmem [resolvable:$true] %s913_s14 }
  0x9d   :  { %s1315_s15 = scalar_lea.vmem %s914_s14, 256  ;;  %p1320_p9 = scmp.lt.s32.totalorder %s914_s14, %s914_s14 }
  0x9e   :  { %p1316_p8 = scmp.ne.s32.totalorder %s914_s14, %s1315_s15  ;;  %p1321_p10 = scmp.lt.s32.totalorder %s1315_s15, %s1315_s15 }
  0xa0   :  { %p1322_p11 = por %p1321_p10, %p1320_p9 }
  0xa2   :  { %p1323_p12 = pnand %p1322_p11, %p1316_p8 }
 0x16c   :  { %v196_v5 = vpop.f32.mrb[0].mxu0 }
 0x16d   :  { %v198_v6 = vpop.f32.mrb[1].mxu0 }
 0x16e   :  { %v200_v7 = vpop.f32.mrb[2].mxu0 }
 0x16f   :  { %v205_v8 = vpack.c.bf16 %v200_v7, %v196_v5  ;;  %v202_v9 = vpop.f32.mrb[3].mxu0 }
 0x170   :  { %265 = vperm.xlu1 %1068, %v202_v9   ;;  %v206_v10 = vpack.c.bf16 %v202_v9, %v198_v6 }
 0x171   :  { %998 = vmatpush3.bf16.msra.mxu0 %v205_v8 }
 0x172   :  { %208 = vrot.lane.b32.xlu0 %v206_v10, %s1364_s7  ;;  %1003 = vmatprep.subr.bf16.mxu0 %v1362_v4 }
 0x176   :  { %260 = vperm.xlu0 %1067, %v198_v6  }
 0x1e4   :  { %v209_v11 = vpop.permute.xlu0 %208 }
 0x1e5   :  { %v215_v12 = vsel %vm210_vm2, %v209_v11, 0 }
 0x1e6   :  { %992 = vmatpush3.bf16.xpose.msra.mxu1 %v215_v12 }
 0x1e7   :  { %449 = vmatprep.subr.bf16.mxu1 %v1077_v44 }
 0x1ed   :  { %994 = vmatmul.mubr.msk.bf16.vlgmr.msra.gmra.mrb[0].mxu1 %vm210_vm2, %v1365_v13 }
 0x1ee   :  { %481 = vmatprep.mubr.bf16.mxu1 %v1361_v0  ;;  %450 = vmatpush1.bf16.msra.mxu1 %v1075_v43  ;;  %v1098_v0 = vld [vmem:[#allocation10 + $0x74] ss:$8 sps:$4 sm:$0xff]  }
 0x1ef   :  { %v266_v19 = vpop.permute.xlu1 %265  ;;  %451 = vmatprep.subr.bf16.mxu1 %v1080_v45 }
 0x1f2   :  { %452 = vmatpush1.bf16.msra.mxu1 %v1078_v46 }
 0x1f3   :  { %453 = vmatprep.subr.bf16.mxu1 %v1083_v47 }
 0x1f5   :  { %v261_v14 = vpop.permute.xlu0 %260 }
 0x1f6   :  { %454 = vmatpush1.bf16.msra.mxu1 %v1081_v48 }
 0x1f7   :  { %455 = vmatprep.subr.bf16.mxu1 %v1086_v49 }
 0x1fa   :  { %456 = vmatpush1.bf16.msra.mxu1 %v1084_v50 }
 0x1fb   :  { %457 = vmatprep.subr.bf16.mxu1 %v1089_v51 }
 0x1fe   :  { %458 = vmatpush1.bf16.msra.mxu1 %v1087_v52 }
 0x1ff   :  { %459 = vmatprep.subr.bf16.mxu1 %v1092_v53 }
 0x202   :  { %460 = vmatpush1.bf16.msra.mxu1 %v1090_v54 }
 0x203   :  { %461 = vmatprep.subr.bf16.mxu1 %v1095_v62  ;;  %v1104_v62 = vld [vmem:[#allocation13 + $0x28] sm:$0xff]  }
 0x206   :  { %462 = vmatpush1.bf16.msra.mxu1 %v1093_v63  ;;  %v1105_v63 = vld [vmem:[#allocation13 + $0x30] sm:$0xff]  }
 0x207   :  { %463 = vmatprep.subr.bf16.mxu1 %v1098_v0  ;;  %v1106_v0 = vld [vmem:[#allocation13 + $0x38] sm:$0xff]  }
 0x20a   :  { %464 = vmatpush1.bf16.msra.mxu1 %v1096_v1  ;;  %v1366_v1 = vmov 8  }
 0x20b   :  { %1035 = vmatprep.subr.bf16.mxu1 %v1362_v4 }
 0x2c0   :  { %v251_v15 = vpop.f32.mrb[0].mxu1 }
 0x2c1   :  { %v268_v17 = vadd.f32 %v261_v14, %v251_v15  ;;  %v995_v18 = vpop.f32.mrb[1].mxu1 }
 0x2c2   :  { %v254_v20 = vpop.f32.mrb[2].mxu1 }
 0x2c3   :  { %v270_v21 = vmul.f32 0.2, %v268_v17  ;;  %v269_v22 = vadd.f32 %v266_v19, %v254_v20  ;;  %v996_v23 = vpop.f32.mrb[3].mxu1 }
 0x2c5   :  { %v272_v25 = vmax.f32 %v268_v17, %v270_v21  ;;  %v271_v26 = vmul.f32 0.2, %v269_v22 }
 0x2c7   :  { %v273_v28 = vmax.f32 %v269_v22, %v271_v26  ;;  %v274_v29 = vadd.f32 %v1552_v24, %v272_v25 }
 0x2c9   :  { %v276_v30 = vsel %vm158_vm0, %v274_v29, -inf  ;;  %v275_v31 = vadd.f32 %v1554_v27, %v273_v28 }
 0x2ca   :  { %277 = vmax.xlane.f32.xlu1 %v276_v30 }
 0x2cb   :  { %v279_v32 = vsel %vm158_vm0, %v275_v31, -inf }
 0x2cc   :  { %280 = vmax.xlane.f32.xlu0 %v279_v32 }
 0x357   :  { %v278_v33 = vpop.xlane.xlu1 %277 }
 0x358   :  { %v282_v34 = vsub.f32 %v274_v29, %v278_v33 }
 0x359   :  { %v281_v35 = vpop.xlane.xlu0 %280 }
 0x35a   :  { %v284_v36 = vmul.f32 1.442695, %v282_v34  ;;  %v283_v37 = vsub.f32 %v275_v31, %v281_v35 }
 0x35c   :  { %1107 = vpow2.f32 %v284_v36  ;;  %v286_v38 = vmul.f32 1.442695, %v283_v37 }
 0x35e   :  { %1109 = vpow2.f32 %v286_v38 }
 0x366   :  { %v1108_v39 = vpop.eup %1107 }
 0x367   :  { %v288_v40 = vsel %vm158_vm0, %v1108_v39, 0.0 }
 0x368   :  { %v1110_v41 = vpop.eup %1109  ;;  %289 = vadd.xlane.f32.xlu1 %v288_v40 }
 0x369   :  { %v291_v42 = vsel %vm158_vm0, %v1110_v41, 0.0 }
 0x36a   :  { %292 = vadd.xlane.f32.xlu0 %v291_v42 }
 0x3f5   :  { %v290_v55 = vpop.xlane.xlu1 %289 }
 0x3f6   :  { %1111 = vrcp.f32 %v290_v55 }
 0x3f7   :  { %v293_v56 = vpop.xlane.xlu0 %292 }
 0x3f8   :  { %1113 = vrcp.f32 %v293_v56  ;;  %v1099_v56 = vld [vmem:[#allocation13] sm:$0xff]  }
 0x400   :  { %v1112_v57 = vpop.eup %1111 }
 0x401   :  { %v296_v59 = vmul.f32 %v1112_v57, %v1108_v39 }
 0x402   :  { %v1114_v58 = vpop.eup %1113 }
 0x403   :  { %v297_v60 = vmul.f32 %v1114_v58, %v1110_v41  ;;  %v1100_v58 = vld [vmem:[#allocation13 + $0x8] sm:$0xff]  }
 0x405   :  { %v298_v61 = vpack.c.bf16 %v297_v60, %v296_v59  ;;  %v1101_v59 = vld [vmem:[#allocation13 + $0x10] sm:$0xff]   ;;  %v1102_v60 = vld [vmem:[#allocation13 + $0x18] sm:$0xff]  }
 0x407   :  { %1000 = vmatmul.mubr.msk.bf16.vlgmr.msra.gmra.mrb[4].mxu0 %vm158_vm0, %v298_v61  ;;  %v1103_v61 = vld [vmem:[#allocation13 + $0x20] sm:$0xff]  }
 0x408   :  { %1005 = vmatprep.mubr.msk.bf16.mxu0 %vm1363_vm1, %v1362_v4 }
 0x4da   :  { %v343_v3 = vpop.f32.mrb[4].mxu0 }
 0x4db   :  { %v344_v5 = vadd.f32 %v934_v2, %v343_v3  ;;  %v1001_v6 = vpop.f32.mrb[5].mxu0 }
 0x4dc   :  { %v346_v7 = vpop.f32.mrb[6].mxu0 }
 0x4dd   :  { %v347_v8 = vadd.f32 %v934_v2, %v346_v7  ;;  %v1002_v9 = vpop.f32.mrb[7].mxu0  ;;  %v350_v10 = vmax.f32 %v344_v5, 0.0  ;;  %v953_v2 = vld [vmem:[#allocation11] ss:$0 sm:$0xff] }
 0x4df   :  { %v351_v11 = vmax.f32 %v347_v8, 0.0 }
 0x4e1   :  { %v352_v12 = vpack.c.bf16 %v351_v11, %v350_v10 }
 0x4e3   :  { %482 = vmatmul.mubr.bf16.vlgmr.msra.gmra.mrb[4].mxu1 %v352_v12 }
 0x4e4   :  { %1037 = vmatprep.mubr.msk.bf16.mxu1 %vm1363_vm1, %v1362_v4 }
 0x5b6   :  { %v483_v14 = vpop.f32.mrb[4].mxu1 }
 0x5b7   :  { %v485_v15 = vpop.f32.mrb[5].mxu1 }
 0x5b8   :  { %543 = vperm.xlu0 %1067, %v485_v15   ;;  %v487_v16 = vpop.f32.mrb[6].mxu1 }
 0x5b9   :  { %v492_v17 = vpack.c.bf16 %v487_v16, %v483_v14  ;;  %v489_v18 = vpop.f32.mrb[7].mxu1 }
 0x5ba   :  { %v493_v19 = vpack.c.bf16 %v489_v18, %v485_v15 }
 0x5bc   :  { %495 = vrot.lane.b32.xlu1 %v493_v19, %s1364_s7  ;;  %1070 = vset.pattern.permute.xlu0 %v1366_v1 }
 0x5c0   :  { %548 = vperm.xlu1 %1068, %v489_v18  }
 0x5c4   :  { %1069 = vset.pattern.permute.xlu1 %v1366_v1 }
 0x62e   :  { %v496_v20 = vpop.permute.xlu1 %495 }
 0x62f   :  { %v498_v21 = vsel %vm210_vm2, %v496_v20, 0 }
 0x630   :  { %1004 = vmatpush3.bf16.xpose.msra.mxu0 %v498_v21 }
 0x631   :  { %1009 = vmatprep.subr.bf16.mxu0 %v1362_v4 }
 0x637   :  { %1006 = vmatmul.mubr.msk.bf16.vlgmr.msra.gmra.mrb[8].mxu0 %vm210_vm2, %v1365_v13  ;;  %v544_v22 = vpop.permute.xlu0 %543 }
 0x638   :  { %1010 = vmatpush3.bf16.msra.mxu0 %v492_v17  ;;  %1011 = vmatprep.mubr.msk.bf16.mxu0 %vm1363_vm1, %v1362_v4 }
 0x639   :  { %1015 = vmatprep.subr.bf16.mxu0 %v1362_v4 }
 0x63f   :  { %v549_v28 = vpop.permute.xlu1 %548 }
 0x70a   :  { %v534_v23 = vpop.f32.mrb[8].mxu0 }
 0x70b   :  { %v551_v25 = vadd.f32 %v544_v22, %v534_v23  ;;  %v1007_v26 = vpop.f32.mrb[9].mxu0 }
 0x70c   :  { %v537_v29 = vpop.f32.mrb[10].mxu0 }
 0x70d   :  { %v553_v30 = vmul.f32 0.2, %v551_v25  ;;  %v552_v31 = vadd.f32 %v549_v28, %v537_v29  ;;  %v1008_v32 = vpop.f32.mrb[11].mxu0 }
 0x70f   :  { %v555_v33 = vmax.f32 %v551_v25, %v553_v30  ;;  %v554_v34 = vmul.f32 0.2, %v552_v31 }
 0x711   :  { %v556_v35 = vmax.f32 %v552_v31, %v554_v34  ;;  %v557_v36 = vadd.f32 %v1552_v24, %v555_v33 }
 0x713   :  { %v559_v37 = vsel %vm158_vm0, %v557_v36, -inf  ;;  %v558_v38 = vadd.f32 %v1554_v27, %v556_v35 }
 0x714   :  { %560 = vmax.xlane.f32.xlu1 %v559_v37 }
 0x715   :  { %v562_v39 = vsel %vm158_vm0, %v558_v38, -inf }
 0x716   :  { %563 = vmax.xlane.f32.xlu0 %v562_v39 }
 0x7a1   :  { %v561_v40 = vpop.xlane.xlu1 %560 }
 0x7a2   :  { %v565_v41 = vsub.f32 %v557_v36, %v561_v40 }
 0x7a3   :  { %v564_v42 = vpop.xlane.xlu0 %563 }
 0x7a4   :  { %v567_v43 = vmul.f32 1.442695, %v565_v41  ;;  %v566_v44 = vsub.f32 %v558_v38, %v564_v42 }
 0x7a6   :  { %1115 = vpow2.f32 %v567_v43  ;;  %v569_v45 = vmul.f32 1.442695, %v566_v44 }
 0x7a8   :  { %1117 = vpow2.f32 %v569_v45 }
 0x7b0   :  { %v1116_v46 = vpop.eup %1115 }
 0x7b1   :  { %v571_v47 = vsel %vm158_vm0, %v1116_v46, 0.0 }
 0x7b2   :  { %v1118_v48 = vpop.eup %1117  ;;  %572 = vadd.xlane.f32.xlu0 %v571_v47 }
 0x7b3   :  { %v574_v49 = vsel %vm158_vm0, %v1118_v48, 0.0 }
 0x7b4   :  { %575 = vadd.xlane.f32.xlu1 %v574_v49 }
 0x83f   :  { %v573_v50 = vpop.xlane.xlu0 %572 }
 0x840   :  { %1119 = vrcp.f32 %v573_v50 }
 0x841   :  { %v576_v51 = vpop.xlane.xlu1 %575 }
 0x842   :  { %1121 = vrcp.f32 %v576_v51 }
 0x84a   :  { %v1120_v52 = vpop.eup %1119 }
 0x84b   :  { %v579_v54 = vmul.f32 %v1120_v52, %v1116_v46  ;;  %v881_v52 = vlaneseq }
 0x84c   :  { %v1122_v53 = vpop.eup %1121 }
 0x84d   :  { %v580_v55 = vmul.f32 %v1122_v53, %v1118_v48  ;;  %v882_v53 = vand.u32 127, %v881_v52 }
 0x84f   :  { %v581_v57 = vpack.c.bf16 %v580_v55, %v579_v54  ;;  %v964_v54 = vld [vmem:[#allocation14] ss:$0 sm:$0xff]  ;;  %vm883_vm3 = vcmp.lt.s32.totalorder %v882_v53, 8 }
 0x851   :  { %1012 = vmatmul.mubr.msk.bf16.vlgmr.msra.gmra.mrb[12].mxu0 %vm158_vm0, %v581_v57 }
 0x852   :  { %1016 = vmatpush3.bf16.msra.mxu0 %v1099_v56  ;;  %1031 = vmatprep.mubr.msk.bf16.mxu0 %vm1363_vm1, %v1362_v4 }
 0x853   :  { %1017 = vmatprep.subr.bf16.mxu0 %v1362_v4 }
 0x856   :  { %1018 = vmatpush3.bf16.msra.mxu0 %v1100_v58 }
 0x857   :  { %1019 = vmatprep.subr.bf16.mxu0 %v1362_v4 }
 0x85a   :  { %1020 = vmatpush3.bf16.msra.mxu0 %v1101_v59 }
 0x85b   :  { %1021 = vmatprep.subr.bf16.mxu0 %v1362_v4 }
 0x85e   :  { %1022 = vmatpush3.bf16.msra.mxu0 %v1102_v60 }
 0x85f   :  { %1023 = vmatprep.subr.bf16.mxu0 %v1362_v4 }
 0x862   :  { %1024 = vmatpush3.bf16.msra.mxu0 %v1103_v61 }
 0x863   :  { %1025 = vmatprep.subr.bf16.mxu0 %v1362_v4 }
 0x866   :  { %1026 = vmatpush3.bf16.msra.mxu0 %v1104_v62 }
 0x867   :  { %1027 = vmatprep.subr.bf16.mxu0 %v1362_v4 }
 0x86a   :  { %1028 = vmatpush3.bf16.msra.mxu0 %v1105_v63 }
 0x86b   :  { %1029 = vmatprep.subr.bf16.mxu0 %v1362_v4 }
 0x86e   :  { %1030 = vmatpush3.bf16.msra.mxu0 %v1106_v0 }
 0x924   :  { %v626_v3 = vpop.f32.mrb[12].mxu0 }
 0x925   :  { %v627_v5 = vadd.f32 %v953_v2, %v626_v3  ;;  %v1013_v6 = vpop.f32.mrb[13].mxu0 }
 0x926   :  { %v629_v7 = vpop.f32.mrb[14].mxu0 }
 0x927   :  { %v630_v8 = vadd.f32 %v953_v2, %v629_v7  ;;  %v1014_v9 = vpop.f32.mrb[15].mxu0  ;;  %v633_v10 = vmax.f32 %v627_v5, 0.0 }
 0x929   :  { %v634_v11 = vmax.f32 %v630_v8, 0.0 }
 0x92b   :  { %v635_v12 = vpack.c.bf16 %v634_v11, %v633_v10 }
 0x92d   :  { %1032 = vmatmul.mubr.bf16.vlgmr.msra.gmra.mrb[16].mxu0 %v635_v12 }
 0xa00   :  { %v734_v14 = vpop.f32.mrb[16].mxu0 }
 0xa01   :  { %791 = vperm.xlu1 %1069, %v734_v14   ;;  %v1033_v15 = vpop.f32.mrb[17].mxu0 }
 0xa02   :  { %v737_v16 = vpop.f32.mrb[18].mxu0 }
 0xa03   :  { %v741_v17 = vpack.c.bf16 %v737_v16, %v734_v14  ;;  %v1034_v18 = vpop.f32.mrb[19].mxu0 }
 0xa05   :  { %796 = vperm.xlu1 %1069, %v737_v16   ;;  %743 = vrot.lane.b32.xlu0 %v741_v17, %s1367_s29 }
 0xa77   :  { %v744_v19 = vpop.permute.xlu0 %743 }
 0xa78   :  { %v746_v20 = vsel %vm210_vm2, %v744_v19, 0 }
 0xa79   :  { %1036 = vmatpush3.bf16.xpose.msra.mxu1 %v746_v20 }
 0xa7a   :  { %1041 = vmatprep.subr.bf16.mxu1 %v1362_v4 }
 0xa80   :  { %1038 = vmatmul.mubr.msk.bf16.vlgmr.msra.gmra.mrb[8].mxu1 %vm210_vm2, %v1365_v13  ;;  %v792_v21 = vpop.permute.xlu1 %791 }
 0xa81   :  { %1042 = vmatpush3.bf16.msra.mxu1 %v741_v17  ;;  %1043 = vmatprep.mubr.msk.bf16.mxu1 %vm1363_vm1, %v1362_v4 }
 0xa84   :  { %v797_v26 = vpop.permute.xlu1 %796 }
 0xb53   :  { %v782_v22 = vpop.f32.mrb[8].mxu1 }
 0xb54   :  { %v799_v23 = vadd.f32 %v792_v21, %v782_v22  ;;  %v1039_v25 = vpop.f32.mrb[9].mxu1 }
 0xb55   :  { %v785_v28 = vpop.f32.mrb[10].mxu1 }
 0xb56   :  { %v801_v29 = vmul.f32 0.2, %v799_v23  ;;  %v800_v30 = vadd.f32 %v797_v26, %v785_v28  ;;  %v1040_v31 = vpop.f32.mrb[11].mxu1 }
 0xb58   :  { %v803_v32 = vmax.f32 %v799_v23, %v801_v29  ;;  %v802_v33 = vmul.f32 0.2, %v800_v30 }
 0xb5a   :  { %v804_v34 = vmax.f32 %v800_v30, %v802_v33  ;;  %v805_v35 = vadd.f32 %v1552_v24, %v803_v32 }
 0xb5c   :  { %v807_v13 = vsel %vm158_vm0, %v805_v35, -inf  ;;  %v806_v36 = vadd.f32 %v1554_v27, %v804_v34 }
 0xb5d   :  { %808 = vmax.xlane.f32.xlu0 %v807_v13 }
 0xb5e   :  { %v810_v4 = vsel %vm158_vm0, %v806_v36, -inf }
 0xb5f   :  { %811 = vmax.xlane.f32.xlu1 %v810_v4 }
 0xbea   :  { %v809_v37 = vpop.xlane.xlu0 %808 }
 0xbeb   :  { %v813_v38 = vsub.f32 %v805_v35, %v809_v37 }
 0xbec   :  { %v812_v39 = vpop.xlane.xlu1 %811 }
 0xbed   :  { %v815_v40 = vmul.f32 1.442695, %v813_v38  ;;  %v814_v41 = vsub.f32 %v806_v36, %v812_v39 }
 0xbef   :  { %1123 = vpow2.f32 %v815_v40  ;;  %v817_v42 = vmul.f32 1.442695, %v814_v41 }
 0xbf1   :  { %1125 = vpow2.f32 %v817_v42 }
 0xbf9   :  { %v1124_v43 = vpop.eup %1123 }
 0xbfa   :  { %v819_v44 = vsel %vm158_vm0, %v1124_v43, 0.0 }
 0xbfb   :  { %v1126_v24 = vpop.eup %1125  ;;  %820 = vadd.xlane.f32.xlu0 %v819_v44 }
 0xbfc   :  { %v822_v45 = vsel %vm158_vm0, %v1126_v24, 0.0 }
 0xbff   :  { %823 = vadd.xlane.f32.xlu0 %v822_v45 }
 0xc88   :  { %v821_v27 = vpop.xlane.xlu0 %820 }
 0xc89   :  { %1127 = vrcp.f32 %v821_v27 }
 0xc8c   :  { %v824_v46 = vpop.xlane.xlu0 %823 }
 0xc8d   :  { %1129 = vrcp.f32 %v824_v46 }
 0xc93   :  { %v1128_v47 = vpop.eup %1127 }
 0xc94   :  { %v827_v49 = vmul.f32 %v1128_v47, %v1124_v43 }
 0xc97   :  { %v1130_v48 = vpop.eup %1129 }
 0xc98   :  { %v828_v50 = vmul.f32 %v1130_v48, %v1126_v24 }
 0xc9a   :  { %v829_v51 = vpack.c.bf16 %v828_v50, %v827_v49 }
 0xc9c   :  { %1044 = vmatmul.mubr.msk.bf16.vlgmr.msra.gmra.mrb[12].mxu1 %vm158_vm0, %v829_v51 }
 0xd6f   :  { %v874_v55 = vpop.f32.mrb[12].mxu1 }
 0xd70   :  { %v875_v56 = vadd.f32 %v964_v54, %v874_v55  ;;  %v1045_v57 = vpop.f32.mrb[13].mxu1 }
 0xd71   :  { %v877_v58 = vpop.f32.mrb[14].mxu1 }
 0xd72   :  { %v878_v59 = vadd.f32 %v964_v54, %v877_v58  ;;  %v1046_v60 = vpop.f32.mrb[15].mxu1  ;;  %v884_v61 = vsel %vm883_vm3, %v875_v56, -1e+30 }
 0xd73   :  { %886 = vmax.xlane.f32.xlu1 %v884_v61 }
 0xd74   :  { %v885_v62 = vsel %vm883_vm3, %v878_v59, -1e+30 }
 0xd75   :  { %888 = vmax.xlane.f32.xlu0 %v885_v62 }
 0xe00   :  { %v887_v63 = vpop.xlane.xlu1 %886 }
 0xe01   :  { %v890_v0 = vsub.f32 %v884_v61, %v887_v63 }
 0xe02   :  { %v889_v1 = vpop.xlane.xlu0 %888 }
 0xe03   :  { %v892_v2 = vmul.f32 1.442695, %v890_v0  ;;  %v891_v3 = vsub.f32 %v885_v62, %v889_v1 }
 0xe05   :  { %1131 = vpow2.f32 %v892_v2  ;;  %v894_v5 = vmul.f32 1.442695, %v891_v3 }
 0xe07   :  { %1133 = vpow2.f32 %v894_v5 }
 0xe0f   :  { %v1132_v6 = vpop.eup %1131 }
 0xe10   :  { %896 = vadd.xlane.f32.xlu1 %v1132_v6 }
 0xe11   :  { %v1134_v7 = vpop.eup %1133 }
 0xe12   :  { %898 = vadd.xlane.f32.xlu0 %v1134_v7 }
 0xe9d   :  { %v897_v8 = vpop.xlane.xlu1 %896 }
 0xe9e   :  { %1135 = vlog2.f32 %v897_v8 }
 0xe9f   :  { %v899_v9 = vpop.xlane.xlu0 %898 }
 0xea0   :  { %1137 = vlog2.f32 %v899_v9 }
 0xea8   :  { %v1136_v10 = vpop.eup %1135 }
 0xea9   :  { %v901_v11 = vmul.f32 0.6931472, %v1136_v10 }
 0xeaa   :  { %v1138_v12 = vpop.eup %1137 }
 0xeab   :  { %v904_v14 = vsub.f32 %v890_v0, %v901_v11  ;;  %v903_v15 = vmul.f32 0.6931472, %v1138_v12 }
 0xead   :  { %906 = vst [vmem:[#allocation16] sm:$0xff] %v904_v14  ;;  %v905_v16 = vsub.f32 %v891_v3, %v903_v15 }
 0xeaf   :  { %907 = vst [vmem:[#allocation16 + $0x8] sm:$0xff] %v905_v16 }
 0xeb0   :  { %1326 = shalt.err (!%p1323_p12)
}
 0xeb1   :  { %s1327_s20 = scalar_lea.hbm %s1628_s8, 256 }
 0xeb2   :  { %p1328_p13 = scmp.ne.s32.totalorder %s1628_s8, %s1327_s20  ;;  %p1331_p0 = scmp.lt.u32.totalorder %s1327_s20, %s1628_s8 }
 0xeb4   :  { %p1333_p1 = pnand %p1331_p0, %p1328_p13 }
 0xeb6   :  { %1336 = shalt.err (!%p1333_p1)
}
 0xeb7   :  { %919 = dma.vmem_to_hbm [thread:$0]  %s914_s14, 256, %s1628_s8, [#allocation4], %s1356_s0, %s1356_s0, %s1357_s13  }
 0xeb8   :  { %1347 = dma.done.wait [#allocation4], 256  }
 0xeb9   :  { %1348 = vsyncadd [#allocation4], 4294967040 }
 0xeba   :  { %923 = vsyncpa [#allocation3], 1 }
 0xebb   :  { %924 = vsyncpa [#allocation6], 1 }
 0xebc   :  { %925 = vsyncpa [#allocation9], 1 }
 0xebd   :  { %926 = vsyncpa [#allocation12], 1 }
 0xebe   :  { %927 = vsyncpa [#allocation15], 1 }
 0xebf   :  { %928 = vsyncpa [#allocation4], 1 }

</bundles_post_ra>
